<compile_context>
chip_gen: v5e
topology: v5e:2x2
jax: 0.10.0
libtpu: 0.0.40
codegen_flags: <defaults>
</compile_context>

<pallas_src>
import functools

import jax
import jax.numpy as jnp
from jax.experimental import pallas as pl
from jax.experimental.pallas import tpu as pltpu


def _fuse_kernel(x1_ref, x2_ref, w_ref, b_ref, out_ref, *, hidden, h_out):
    """One (TM, H) row-tile of the fused forward pass.

    x1_ref, x2_ref : (TM, H)        inputs (caller dtype)
    w_ref          : (4H, Np)       combined [W_fuse | w_gate | 0-pad], resident
    b_ref          : (1, Np)  f32   combined [b_fuse | b_gate | 0-pad], resident
    out_ref        : (TM, H_out)
    """
    H = hidden
    x1 = x1_ref[...]
    x2 = x2_ref[...]

    # K-split of the [x1, x2, x1*x2, x1-x2] feature concat: each partial
    # product feeds the MXU directly -> no cross-lane concat, no (TM, 4H)
    # f32 feature buffer in VMEM.
    acc = jnp.dot(x1, w_ref[0 * H:1 * H, :], preferred_element_type=jnp.float32)
    acc = acc + jnp.dot(x2, w_ref[1 * H:2 * H, :],
                        preferred_element_type=jnp.float32)
    acc = acc + jnp.dot(x1 * x2, w_ref[2 * H:3 * H, :],
                        preferred_element_type=jnp.float32)
    acc = acc + jnp.dot(x1 - x2, w_ref[3 * H:4 * H, :],
                        preferred_element_type=jnp.float32)
    acc = acc + b_ref[...]          # (1, Np) broadcast; gate bias at column h_out

    m = jnp.tanh(acc[:, :h_out])                      # (TM, H_out)  f32
    g = jax.nn.sigmoid(acc[:, h_out:h_out + 1])       # (TM, 1)      f32

    # g*m + (1-g)*x1  ==  x1 + g*(m - x1)
    x1f = x1.astype(jnp.float32)
    out_ref[...] = (x1f + g * (m - x1f)).astype(out_ref.dtype)


def _round_up(x, m):
    return ((x + m - 1) // m) * m


def fuse_forward(input1, input2, w_fuse, b_fuse, w_gate, b_gate):
    """input1/input2: (B, S, H).  w_fuse: (4H, H_out), b_fuse: (H_out,),
    w_gate: (4H, 1), b_gate: (1,).  Returns (B, S, H_out)."""
    B, S, H = input1.shape
    H_out = w_fuse.shape[1]
    if H_out != H:
        raise ValueError(
            f"Fuse residual blend requires output_size == input_size "
            f"(got H_out={H_out}, H={H}).")
    M = B * S
    itemsize = jnp.dtype(input1.dtype).itemsize

    # ---- combined, lane-dense weight: [W_fuse | w_gate | zero-pad] ----------
    Np = _round_up(H_out + 1, 128)                       # lane-dense matmul N
    w_comb = jnp.zeros((4 * H, Np), dtype=w_fuse.dtype)
    w_comb = w_comb.at[:, :H_out].set(w_fuse)
    w_comb = w_comb.at[:, H_out].set(w_gate[:, 0].astype(w_fuse.dtype))
    b_comb = jnp.zeros((1, Np), dtype=jnp.float32)
    b_comb = b_comb.at[0, :H_out].set(b_fuse.astype(jnp.float32))
    b_comb = b_comb.at[0, H_out].set(b_gate.astype(jnp.float32)[0])

    # ---- pick a row-tile TM that fits a conservative VMEM budget ------------
    # per-row bytes: double-buffered x1/x2/out blocks + f32 (TM, Np) live acc.
    budget = 8 * 1024 * 1024                # safe on v5e/v6e scoped and v7x
    per_row = 2 * (2 * H + H_out) * itemsize + Np * 4
    tm = min(512, max(8, budget // per_row))
    tm = max(8, (tm // 8) * 8)
    tm = min(tm, _round_up(M, 8))
    M_pad = _round_up(M, tm)

    x1 = input1.reshape(M, H)
    x2 = input2.reshape(M, H)
    if M_pad != M:
        pad = M_pad - M
        x1 = jnp.pad(x1, ((0, pad), (0, 0)))
        x2 = jnp.pad(x2, ((0, pad), (0, 0)))

    grid = (M_pad // tm,)

    cost = pl.CostEstimate(
        flops=2 * M_pad * (4 * H) * Np,
        transcendentals=M_pad * (H_out + 2),
        bytes_accessed=(2 * M_pad * H + M_pad * H_out) * itemsize
                       + 4 * H * Np * jnp.dtype(w_fuse.dtype).itemsize
                       + Np * 4,
    )

    out_pad = pl.pallas_call(
        functools.partial(_fuse_kernel, hidden=H, h_out=H_out),
        out_shape=jax.ShapeDtypeStruct((M_pad, H_out), input1.dtype),
        grid=grid,
        in_specs=[
            pl.BlockSpec((tm, H), lambda i: (i, 0)),        # x1: row-blocked
            pl.BlockSpec((tm, H), lambda i: (i, 0)),        # x2: row-blocked
            pl.BlockSpec((4 * H, Np), lambda i: (0, 0)),    # weights: resident
            pl.BlockSpec((1, Np), lambda i: (0, 0)),        # bias:    resident
        ],
        out_specs=pl.BlockSpec((tm, H_out), lambda i: (i, 0)),
        compiler_params=pltpu.CompilerParams(
            dimension_semantics=("parallel",),               # megacore on v7x
        ),
        cost_estimate=cost,
    )(x1, x2, w_comb, b_comb)

    return out_pad[:M].reshape(B, S, H_out)


if __name__ == "__main__":
    # Module hyper-params (num=2; output_size == input_size so residual works)
    B, S, H = 2, 8, 32
    H_out = H
    feat = H * 4   # input_size * (num + 2*num - 2) with num=2 -> 4*H

    key = jax.random.PRNGKey(0)
    k1, k2, k3, k4, k5, k6 = jax.random.split(key, 6)

    input1 = jax.random.normal(k1, (B, S, H), dtype=jnp.float32)
    input2 = jax.random.normal(k2, (B, S, H), dtype=jnp.float32)

    # Deterministic "Linear" params.  PyTorch stores weight as (out, in);
    # here we store transposed (in, out) for the row-major matmul.
    w_fuse = (jax.random.normal(k3, (feat, H_out), dtype=jnp.float32)
              * (1.0 / jnp.sqrt(feat)))
    b_fuse = jax.random.normal(k4, (H_out,), dtype=jnp.float32) * 0.01
    w_gate = (jax.random.normal(k5, (feat, 1), dtype=jnp.float32)
              * (1.0 / jnp.sqrt(feat)))
    b_gate = jax.random.normal(k6, (1,), dtype=jnp.float32) * 0.01

    out = fuse_forward(input1, input2, w_fuse, b_fuse, w_gate, b_gate)
    out = jax.block_until_ready(out)

    # Pure-JAX reference for a sanity check.
    x = jnp.concatenate([input1, input2, input1 * input2, input1 - input2],
                        axis=2)
    m_ref = jnp.tanh(x @ w_fuse + b_fuse)
    g_ref = jax.nn.sigmoid(x @ w_gate + b_gate)
    ref = g_ref * m_ref + (1.0 - g_ref) * input1

    assert out.shape == (B, S, H_out)
    assert jnp.allclose(out, ref, atol=1e-5, rtol=1e-5)
    print("KERNEL_OK")
</pallas_src>

<mosaic_0001>
module attributes {stable_mosaic.version = 11 : i64} {
  func.func @_fuse_kernel(%arg0: i32, %arg1: memref<16x32xf32, #tpu.memory_space<vmem>>, %arg2: memref<16x32xf32, #tpu.memory_space<vmem>>, %arg3: memref<128x128xf32, #tpu.memory_space<vmem>>, %arg4: memref<1x128xf32, #tpu.memory_space<vmem>>, %arg5: memref<16x32xf32, #tpu.memory_space<vmem>>) attributes {dimension_semantics = [#tpu.dimension_semantics<parallel>], iteration_bounds = array<i64: 1>, scalar_prefetch = 0 : i64, scratch_operands = 0 : i64, tpu.core_type = #tpu.core_type<tc>, window_params = [{transform_indices = @transform_0, window_bounds = array<i64: 16, 32>}, {transform_indices = @transform_1, window_bounds = array<i64: 16, 32>}, {pipeline_mode = #tpu.pipeline_mode<synchronous>, transform_indices = @transform_2, window_bounds = array<i64: 128, 128>}, {pipeline_mode = #tpu.pipeline_mode<synchronous>, transform_indices = @transform_3, window_bounds = array<i64: 1, 128>}, {transform_indices = @transform_4, window_bounds = array<i64: 16, 32>}]} {
    %c0 = arith.constant 0 : index
    %c0_0 = arith.constant 0 : index
    %0 = vector.load %arg1[%c0, %c0_0] : memref<16x32xf32, #tpu.memory_space<vmem>>, vector<16x32xf32>
    %c0_1 = arith.constant 0 : index
    %c0_2 = arith.constant 0 : index
    %1 = vector.load %arg2[%c0_1, %c0_2] : memref<16x32xf32, #tpu.memory_space<vmem>>, vector<16x32xf32>
    %c0_3 = arith.constant 0 : index
    %c0_4 = arith.constant 0 : index
    %2 = vector.load %arg3[%c0_3, %c0_4] : memref<128x128xf32, #tpu.memory_space<vmem>>, vector<32x128xf32>
    %cst = arith.constant dense<0.000000e+00> : vector<16x128xf32>
    %3 = tpu.matmul %0, %2, %cst {dimension_numbers = #tpu.dot_dimension_numbers<[1], [0], [0], [1], [0, 0, 1, 1], [], []>} : vector<16x32xf32>, vector<32x128xf32>, vector<16x128xf32> -> vector<16x128xf32>
    %c32 = arith.constant 32 : index
    %c0_5 = arith.constant 0 : index
    %4 = vector.load %arg3[%c32, %c0_5] : memref<128x128xf32, #tpu.memory_space<vmem>>, vector<32x128xf32>
    %cst_6 = arith.constant dense<0.000000e+00> : vector<16x128xf32>
    %5 = tpu.matmul %1, %4, %cst_6 {dimension_numbers = #tpu.dot_dimension_numbers<[1], [0], [0], [1], [0, 0, 1, 1], [], []>} : vector<16x32xf32>, vector<32x128xf32>, vector<16x128xf32> -> vector<16x128xf32>
    %6 = arith.addf %3, %5 : vector<16x128xf32>
    %7 = arith.mulf %0, %1 : vector<16x32xf32>
    %c64 = arith.constant 64 : index
    %c0_7 = arith.constant 0 : index
    %8 = vector.load %arg3[%c64, %c0_7] : memref<128x128xf32, #tpu.memory_space<vmem>>, vector<32x128xf32>
    %cst_8 = arith.constant dense<0.000000e+00> : vector<16x128xf32>
    %9 = tpu.matmul %7, %8, %cst_8 {dimension_numbers = #tpu.dot_dimension_numbers<[1], [0], [0], [1], [0, 0, 1, 1], [], []>} : vector<16x32xf32>, vector<32x128xf32>, vector<16x128xf32> -> vector<16x128xf32>
    %10 = arith.addf %6, %9 : vector<16x128xf32>
    %11 = arith.subf %0, %1 : vector<16x32xf32>
    %c96 = arith.constant 96 : index
    %c0_9 = arith.constant 0 : index
    %12 = vector.load %arg3[%c96, %c0_9] : memref<128x128xf32, #tpu.memory_space<vmem>>, vector<32x128xf32>
    %cst_10 = arith.constant dense<0.000000e+00> : vector<16x128xf32>
    %13 = tpu.matmul %11, %12, %cst_10 {dimension_numbers = #tpu.dot_dimension_numbers<[1], [0], [0], [1], [0, 0, 1, 1], [], []>} : vector<16x32xf32>, vector<32x128xf32>, vector<16x128xf32> -> vector<16x128xf32>
    %14 = arith.addf %10, %13 : vector<16x128xf32>
    %c0_11 = arith.constant 0 : index
    %c0_12 = arith.constant 0 : index
    %15 = vector.load %arg4[%c0_11, %c0_12] : memref<1x128xf32, #tpu.memory_space<vmem>>, vector<1x128xf32>
    %16 = vector.broadcast %15 : vector<1x128xf32> to vector<16x128xf32>
    %17 = arith.addf %14, %16 : vector<16x128xf32>
    %18 = vector.extract_strided_slice %17 {offsets = [0, 0], sizes = [16, 32], strides = [1, 1]} : vector<16x128xf32> to vector<16x32xf32>
    %19 = math.tanh %18 : vector<16x32xf32>
    %20 = vector.extract_strided_slice %17 {offsets = [0, 32], sizes = [16, 1], strides = [1, 1]} : vector<16x128xf32> to vector<16x1xf32>
    %21 = arith.negf %20 : vector<16x1xf32>
    %22 = math.exp %21 : vector<16x1xf32>
    %cst_13 = arith.constant 1.000000e+00 : f32
    %23 = vector.broadcast %cst_13 : f32 to vector<16x1xf32>
    %24 = arith.addf %23, %22 : vector<16x1xf32>
    %25 = arith.divf %23, %24 : vector<16x1xf32>
    %26 = arith.subf %19, %0 : vector<16x32xf32>
    %27 = vector.broadcast %25 : vector<16x1xf32> to vector<16x32xf32>
    %28 = arith.mulf %27, %26 : vector<16x32xf32>
    %29 = arith.addf %0, %28 : vector<16x32xf32>
    %c0_14 = arith.constant 0 : index
    %c0_15 = arith.constant 0 : index
    %30 = vector.load %arg5[%c0_14, %c0_15] : memref<16x32xf32, #tpu.memory_space<vmem>>, vector<16x32xf32>
    tpu.vector_store %arg5[%c0_14, %c0_15], %29 {strides = array<i32>} : memref<16x32xf32, #tpu.memory_space<vmem>>, vector<16x32xf32>,
    return
  }
  func.func @transform_0(%arg0: i32) -> (i32, i32) {
    %c0_i32 = arith.constant 0 : i32
    %c0_i32_0 = arith.constant 0 : i32
    return %arg0, %c0_i32 : i32, i32
  }
  func.func @transform_1(%arg0: i32) -> (i32, i32) {
    %c0_i32 = arith.constant 0 : i32
    %c0_i32_0 = arith.constant 0 : i32
    return %arg0, %c0_i32 : i32, i32
  }
  func.func @transform_2(%arg0: i32) -> (i32, i32) {
    %c0_i32 = arith.constant 0 : i32
    %c0_i32_0 = arith.constant 0 : i32
    %c0_i32_1 = arith.constant 0 : i32
    return %c0_i32, %c0_i32_0 : i32, i32
  }
  func.func @transform_3(%arg0: i32) -> (i32, i32) {
    %c0_i32 = arith.constant 0 : i32
    %c0_i32_0 = arith.constant 0 : i32
    %c0_i32_1 = arith.constant 0 : i32
    return %c0_i32, %c0_i32_0 : i32, i32
  }
  func.func @transform_4(%arg0: i32) -> (i32, i32) {
    %c0_i32 = arith.constant 0 : i32
    %c0_i32_0 = arith.constant 0 : i32
    return %arg0, %c0_i32 : i32, i32
  }
}

</mosaic_0001>

<bundles_post_ra>
// kernel: tpu_custom_call.1
= control target key start
LH: loop header
LB: loop body
LE: loop exit
PB: predicated region body
PF: predicated region fallthrough
CT: control target
= control target key end

     0   :  { %9 = vsyncpa [#allocation3], 0  ;;  %s510_s0 = inlined_call_operand.hbm [shape: f32[16,32], index: 0, kind: input, shape index: {}]   ;;  %s511_s1 = inlined_call_operand.hbm [shape: f32[16,32], index: 1, kind: input, shape index: {}]   ;;  %s512_s2 = inlined_call_operand.hbm [shape: f32[128,128], index: 2, kind: input, shape index: {}]   ;;  %s513_s3 = inlined_call_operand.vmem [shape: f32[1,128], index: 3, kind: input, shape index: {}]   ;;  %s514_s4 = inlined_call_operand.hbm [shape: f32[16,32], index: 4, kind: output, shape index: {}]  }
   0x1   :  { %10 = vsyncpa [#allocation6], 0 }
   0x2   :  { %11 = vsyncpa [#allocation4], 0  ;;  %s29_s17 = sshll.u32 %s511_s1, 4  ;;  %s427_s18 = smov [#allocation5]   ;;  %s30_s17 = int_to_ptr.hbm [resolvable:$true] %s29_s17 }
   0x3   :  { %s31_s19 = sshll.u32 %s427_s18, 4  ;;  %s16_s22 = sshll.u32 %s510_s0, 4  ;;  %s32_s19 = int_to_ptr.vmem [resolvable:$true] %s31_s19  ;;  %s17_s22 = int_to_ptr.hbm [resolvable:$true] %s16_s22 }
   0x4   :  { %s428_s23 = smov 128   ;;  %s429_s24 = smov 8  }
   0x5   :  { %37 = dma.hbm_to_vmem [thread:$0]  %s30_s17, 256, %s32_s19, [#allocation6], %s428_s23, %s428_s23, %s429_s24  }
   0x6   :  { %s430_s25 = smov [#allocation2]   ;;  %s42_s1 = sshll.u32 %s512_s2, 4  ;;  %s43_s1 = int_to_ptr.hbm [resolvable:$true] %s42_s1 }
   0x7   :  { %s18_s26 = sshll.u32 %s430_s25, 4  ;;  %s431_s0 = smov [#allocation7]   ;;  %s19_s26 = int_to_ptr.vmem [resolvable:$true] %s18_s26 }
   0x8   :  { %24 = dma.hbm_to_vmem [thread:$0]  %s17_s22, 256, %s19_s26, [#allocation3], %s428_s23, %s428_s23, %s429_s24  }
   0x9   :  { %s44_s29 = sshll.u32 %s431_s0, 4  ;;  %s45_s29 = int_to_ptr.vmem [resolvable:$true] %s44_s29 }
   0xa   :  { %50 = dma.hbm_to_vmem [thread:$0]  %s43_s1, 2048, %s45_s29, [#allocation6], %s428_s23, %s428_s23, %s429_s24  }
   0xb   :  { %421 = dma.done.wait [#allocation3], 256  }
   0xc   :  { %422 = vsyncadd [#allocation3], 4294967040 }
   0xd   :  { %423 = dma.done.wait [#allocation6], 2304  }
   0xe   :  { %424 = vsyncadd [#allocation6], 4294964992  ;;  %v141_v0 = vld [vmem:[#allocation7 + $0x58] sm:$0xff]  ;;  %v140_v1 = vld [vmem:[#allocation7 + $0x50] sm:$0xff]  ;;  %vm77_vm0 = vcmask 261120   ;;  %v432_v24 = vmov 32  }
   0xf   :  { %v178_v2 = vld [vmem:[#allocation7 + $0x78] sm:$0xff]  ;;  %160 = vmatpush.msra.mxu2 %v141_v0  ;;  %v139_v5 = vld [vmem:[#allocation7 + $0x48] sm:$0xff]  ;;  %v177_v6 = vld [vmem:[#allocation7 + $0x70] sm:$0xff]  ;;  %311 = vset.pattern.permute.xlu0 %v432_v24  ;;  %s280_s8 = sshll.u32 %s514_s4, 4  ;;  %s281_s8 = int_to_ptr.hbm [resolvable:$true] %s280_s8 }
  0x10   :  { %197 = vmatpush.msra.mxu3 %v178_v2  ;;  %v76_v3 = vld [vmem:[#allocation7 + $0x38] sm:$0xff]  ;;  %v75_v7 = vld [vmem:[#allocation7 + $0x30] sm:$0xff]  ;;  %v138_v9 = vld [vmem:[#allocation7 + $0x40] sm:$0xff] }
  0x11   :  { %v72_v4 = vld [vmem:[#allocation7 + $0x18] sm:$0xff]  ;;  %96 = vmatpush.msra.mxu0 %v76_v3  ;;  %v71_v8 = vld [vmem:[#allocation7 + $0x10] sm:$0xff]  ;;  %161 = vmatpush.msra.mxu2 %v140_v1  ;;  %v176_v10 = vld [vmem:[#allocation7 + $0x68] sm:$0xff] }
  0x12   :  { %125 = vmatpush.msra.mxu1 %v72_v4  ;;  %198 = vmatpush.msra.mxu3 %v177_v6  ;;  %v477_v11 = vld [vmem:[#allocation2] sm:$0xff]  ;;  %v67_v12 = vld [vmem:[#allocation5] sm:$0xff]  ;;  %v74_v13 = vld [vmem:[#allocation7 + $0x28] sm:$0xff] }
  0x13   :  { %97 = vmatpush.msra.mxu0 %v75_v7  ;;  %v70_v14 = vld [vmem:[#allocation7 + $0x8] sm:$0xff]  ;;  %162 = vmatpush.msra.mxu2 %v139_v5  ;;  %v136_v15 = vmul.f32 %v67_v12, %v477_v11  ;;  %v175_v16 = vld [vmem:[#allocation7 + $0x60] sm:$0xff]  ;;  %v173_v17 = vsub.f32 %v477_v11, %v67_v12  ;;  %v68_v21 = vld [vmem:[#allocation5 + $0x8] sm:$0xff] }
  0x14   :  { %126 = vmatpush.msra.mxu1 %v71_v8  ;;  %199 = vmatpush.msra.mxu3 %v176_v10  ;;  %v73_v18 = vld [vmem:[#allocation7 + $0x20] sm:$0xff]  ;;  %v483_v20 = vld [vmem:[#allocation2 + $0x8] sm:$0xff] }
  0x15   :  { %98 = vmatpush.msra.mxu0 %v74_v13  ;;  %v69_v19 = vld [vmem:[#allocation7] sm:$0xff]  ;;  %163 = vmatpush.msra.mxu2 %v138_v9  ;;  %v137_v22 = vmul.f32 %v68_v21, %v483_v20  ;;  %v174_v23 = vsub.f32 %v483_v20, %v68_v21 }
  0x16   :  { %127 = vmatpush.msra.mxu1 %v70_v14  ;;  %200 = vmatpush.msra.mxu3 %v175_v16  ;;  %v312_v31 = vld [vmem:[%s513_s3] ss:$0 sm:$0xff]  ;;  %s433_s3 = smov [#allocation8]  }
  0x17   :  { %298 = vmatmul.msk.f32.vlgmr.msra.gmra.mxu2 %vm77_vm0, %v136_v15  ;;  %300 = vmatmul.msk.f32.vlgmr.msra.gmra.mxu3 %vm77_vm0, %v173_v17  ;;  %s278_s5 = sshll.u32 %s433_s3, 4  ;;  %s279_s5 = int_to_ptr.vmem [resolvable:$true] %s278_s5 }
  0x18   :  { %99 = vmatpush.msra.mxu0 %v73_v18  ;;  %128 = vmatpush.msra.mxu1 %v69_v19 }
  0x19   :  { %294 = vmatmul.msk.f32.vlgmr.msra.gmra.mxu0 %vm77_vm0, %v67_v12  ;;  %296 = vmatmul.msk.f32.vlgmr.msra.gmra.mxu1 %vm77_vm0, %v477_v11 }
  0x1f   :  { %299 = vmatmul.msk.f32.gmra.mxu2 %vm77_vm0, %v137_v22  ;;  %301 = vmatmul.msk.f32.gmra.mxu3 %vm77_vm0, %v174_v23 }
  0x21   :  { %295 = vmatmul.msk.f32.gmra.mxu0 %vm77_vm0, %v68_v21  ;;  %297 = vmatmul.msk.f32.gmra.mxu1 %vm77_vm0, %v483_v20 }
  0x96   :  { %v101_v25 = vpop.f32.mrf.mxu0  ;;  %v130_v26 = vpop.f32.mrf.mxu1 }
  0x97   :  { %v131_v27 = vadd.f32 %v130_v26, %v101_v25 }
  0x9a   :  { %v165_v28 = vpop.f32.mrf.mxu2  ;;  %v202_v29 = vpop.f32.mrf.mxu3 }
  0x9b   :  { %v171_v30 = vadd.f32 %v165_v28, %v131_v27 }
  0x9d   :  { %v208_v32 = vadd.f32 %v202_v29, %v171_v30 }
  0x9e   :  { %v104_v33 = vpop.f32.mrf.mxu0  ;;  %v133_v34 = vpop.f32.mrf.mxu1 }
  0x9f   :  { %v214_v35 = vadd.f32 %v312_v31, %v208_v32  ;;  %v134_v36 = vadd.f32 %v133_v34, %v104_v33 }
  0xa1   :  { %v302_v37 = vmul.f32 -1.442695, %v214_v35 }
  0xa2   :  { %v168_v38 = vpop.f32.mrf.mxu2  ;;  %v205_v39 = vpop.f32.mrf.mxu3 }
  0xa3   :  { %313 = vpow2.f32 %v302_v37  ;;  %v172_v40 = vadd.f32 %v168_v38, %v134_v36 }
  0xa5   :  { %v209_v41 = vadd.f32 %v205_v39, %v172_v40 }
  0xa7   :  { %v215_v42 = vadd.f32 %v312_v31, %v209_v41 }
  0xa9   :  { %v314_v43 = vpop.eup %313  ;;  %v303_v44 = vmul.f32 -1.442695, %v215_v42 }
  0xaa   :  { %v224_v45 = vadd.f32 1.0, %v314_v43 }
  0xab   :  { %315 = vpow2.f32 %v303_v44 }
  0xac   :  { %317 = vrcp.f32 %v224_v45  ;;  %v237_v51 = vand.u32 2147483648, %v224_v45  ;;  %v235_v53 = vand.u32 2147483647, %v224_v45  ;;  %vm231_vm2 = vweird.f32 %v224_v45 }
  0xae   :  { %v238_v56 = vor.u32 1.1754944e-38, %v237_v51  ;;  %vm236_vm4 = vcmp.eq.f32.partialorder %v235_v53, 8.507059e+37 }
  0xb1   :  { %v316_v46 = vpop.eup %315 }
  0xb2   :  { %v318_v47 = vpop.eup %317  ;;  %v225_v48 = vadd.f32 1.0, %v316_v46 }
  0xb3   :  { %v227_v49 = vmul.f32 %v318_v47, %v224_v45  ;;  %vm232_vm1 = vweird.f32 %v318_v47 }
  0xb4   :  { %319 = vrcp.f32 %v225_v48  ;;  %vm233_vm3 = vmor %vm231_vm2, %vm232_vm1  ;;  %v252_v61 = vand.u32 2147483648, %v225_v48  ;;  %v250_v63 = vand.u32 2147483647, %v225_v48  ;;  %vm246_vm6 = vweird.f32 %v225_v48 }
  0xb5   :  { %v228_v50 = vsub.f32 1.0, %v227_v49  ;;  %321 = vtanh.f32 %v214_v35 }
  0xb6   :  { %v253_v1 = vor.u32 1.1754944e-38, %v252_v61  ;;  %vm251_vm8 = vcmp.eq.f32.partialorder %v250_v63, 8.507059e+37  ;;  %323 = vtanh.f32 %v215_v42 }
  0xb7   :  { %v229_v52 = vmul.f32 %v318_v47, %v228_v50 }
  0xb9   :  { %v230_v54 = vadd.f32 %v318_v47, %v229_v52 }
  0xba   :  { %v320_v55 = vpop.eup %319 }
  0xbb   :  { %v234_v57 = vsel %vm233_vm3, %v318_v47, %v230_v54  ;;  %v242_v58 = vmul.f32 %v320_v55, %v225_v48  ;;  %vm247_vm5 = vweird.f32 %v320_v55  ;;  %v322_v4 = vpop.eup %321 }
  0xbc   :  { %v239_v59 = vsel %vm236_vm4, %v238_v56, %v234_v57  ;;  %vm248_vm7 = vmor %vm246_vm6, %vm247_vm5  ;;  %v256_v5 = vsub.f32 %v322_v4, %v477_v11  ;;  %v324_v9 = vpop.eup %323 }
  0xbd   :  { %260 = vperm.xlu0 %311, %v239_v59   ;;  %v243_v60 = vsub.f32 1.0, %v242_v58  ;;  %v257_v10 = vsub.f32 %v324_v9, %v483_v20 }
  0xbf   :  { %v244_v62 = vmul.f32 %v320_v55, %v243_v60 }
  0xc1   :  { %v245_v0 = vadd.f32 %v320_v55, %v244_v62 }
  0xc3   :  { %v249_v2 = vsel %vm248_vm7, %v320_v55, %v245_v0 }
  0xc4   :  { %v254_v3 = vsel %vm251_vm8, %v253_v1, %v249_v2 }
  0xc5   :  { %265 = vperm.xlu0 %311, %v254_v3  }
 0x12f   :  { %v261_v6 = vpop.permute.xlu0 %260 }
 0x130   :  { %v268_v7 = vmul.f32 %v261_v6, %v256_v5 }
 0x132   :  { %v270_v8 = vadd.f32 %v268_v7, %v477_v11 }
 0x134   :  { %272 = vst.msk [vmem:[#allocation8] sm:$0xff] %vm77_vm0, %v270_v8 }
 0x137   :  { %v266_v12 = vpop.permute.xlu0 %265 }
 0x138   :  { %v269_v13 = vmul.f32 %v266_v12, %v257_v10 }
 0x13a   :  { %v271_v14 = vadd.f32 %v269_v13, %v483_v20 }
 0x13c   :  { %273 = vst.msk [vmem:[#allocation8 + $0x8] sm:$0xff] %vm77_vm0, %v271_v14 }
 0x13d   :  { %286 = dma.vmem_to_hbm [thread:$0]  %s279_s5, 256, %s281_s8, [#allocation4], %s428_s23, %s428_s23, %s429_s24  }
 0x13e   :  { %425 = dma.done.wait [#allocation4], 256  }
 0x13f   :  { %426 = vsyncadd [#allocation4], 4294967040 }
 0x140   :  { %291 = vsyncpa [#allocation3], 1 }
 0x141   :  { %292 = vsyncpa [#allocation6], 1 }
 0x142   :  { %293 = vsyncpa [#allocation4], 1 }

</bundles_post_ra>
